<compile_context>
chip_gen: v7x
topology: tpu7x:2x2x1
jax: 0.10.0
libtpu: 0.0.40
codegen_flags: <defaults>
</compile_context>

<pallas_src>
import jax
import jax.numpy as jnp
from jax.experimental import pallas as pl
from jax.experimental.pallas import tpu as pltpu


def _svm_kernel(w_ref, b_ref, x_ref, o_ref):
    # w_ref: SMEM f32[2], b_ref: SMEM f32[1]
    # x_ref: VMEM f32[2, T]  (features on sublanes, batch on lanes)
    # o_ref: VMEM f32[1, T]  (lane-dense output row)
    w0 = w_ref[0]
    w1 = w_ref[1]
    b = b_ref[0]
    x = x_ref[...]                                     # [2, T]
    o_ref[...] = w0 * x[0:1, :] + w1 * x[1:2, :] - b   # [1, T], pure VPU FMA


def svm_forward(x: jax.Array, w: jax.Array, b: jax.Array, *, tile: int = 131072) -> jax.Array:
    """x: [N, F=2], w: [F=2], b: [1]  ->  [N] f32  (== x @ w - b)."""
    n, f = x.shape
    assert f == 2, "SVM module has exactly 2 features"
    assert tile % 128 == 0

    # Batch on the lane axis; pad N up to a 128-aligned tile grid.
    x_t = x.astype(jnp.float32).T                      # [F, N]
    lane = 128
    n_pad128 = ((n + lane - 1) // lane) * lane
    t = min(tile, n_pad128)                            # tile size, multiple of 128
    n_pad = ((n_pad128 + t - 1) // t) * t
    if n_pad != n:
        x_t = jnp.pad(x_t, ((0, 0), (0, n_pad - n)))

    grid = (n_pad // t,)

    out = pl.pallas_call(
        _svm_kernel,
        out_shape=jax.ShapeDtypeStruct((1, n_pad), jnp.float32),
        grid=grid,
        in_specs=[
            # scalar params -> SMEM, read as scalars inside the kernel
            pl.BlockSpec(memory_space=pltpu.MemorySpace.SMEM),
            pl.BlockSpec(memory_space=pltpu.MemorySpace.SMEM),
            # x tiles: full F on sublanes, T lanes of batch per grid step
            pl.BlockSpec((2, t), lambda i: (0, i)),
        ],
        out_specs=pl.BlockSpec((1, t), lambda i: (0, i)),
        compiler_params=pltpu.CompilerParams(
            dimension_semantics=("parallel",),  # shard batch tiles across TCs on v7x
        ),
    )(
        w.astype(jnp.float32).reshape(2),
        b.astype(jnp.float32).reshape(1),
        x_t,
    )
    return out[0, :n]


if __name__ == "__main__":
    key = jax.random.PRNGKey(0)
    kx, kw, kb = jax.random.split(key, 3)

    # Module params: w ~ U[0,1) of shape (2,), b ~ U[0,1) of shape (1,)
    w = jax.random.uniform(kw, (2,), dtype=jnp.float32)
    b = jax.random.uniform(kb, (1,), dtype=jnp.float32)

    # Example input consistent with forward: x of shape [N, 2]
    x = jax.random.normal(kx, (8, 2), dtype=jnp.float32)

    y = svm_forward(x, w, b)
    jax.block_until_ready(y)

    # Reference check in plain JAX
    y_ref = jnp.matmul(x, w) - b
    assert y.shape == y_ref.shape == (8,)
    assert jnp.allclose(y, y_ref, atol=1e-6), (y, y_ref)

    print("KERNEL_OK")
</pallas_src>

<mosaic_0001>
module attributes {stable_mosaic.version = 11 : i64} {
  func.func @_svm_kernel(%arg0: i32, %arg1: memref<2xf32, #tpu.memory_space<smem>>, %arg2: memref<1xf32, #tpu.memory_space<smem>>, %arg3: memref<2x128xf32, #tpu.memory_space<vmem>>, %arg4: memref<1x128xf32, #tpu.memory_space<vmem>>) attributes {dimension_semantics = [#tpu.dimension_semantics<parallel>], iteration_bounds = array<i64: 1>, scalar_prefetch = 0 : i64, scratch_operands = 0 : i64, tpu.core_type = #tpu.core_type<tc>, window_params = [{transform_indices = @transform_0, window_bounds = array<i64: 2>}, {transform_indices = @transform_1, window_bounds = array<i64: 1>}, {transform_indices = @transform_2, window_bounds = array<i64: 2, 128>}, {transform_indices = @transform_3, window_bounds = array<i64: 1, 128>}]} {
    %c0 = arith.constant 0 : index
    %0 = memref.load %arg1[%c0] : memref<2xf32, #tpu.memory_space<smem>>
    %c1 = arith.constant 1 : index
    %1 = memref.load %arg1[%c1] : memref<2xf32, #tpu.memory_space<smem>>
    %c0_0 = arith.constant 0 : index
    %2 = memref.load %arg2[%c0_0] : memref<1xf32, #tpu.memory_space<smem>>
    %c0_1 = arith.constant 0 : index
    %c0_2 = arith.constant 0 : index
    %3 = vector.load %arg3[%c0_1, %c0_2] : memref<2x128xf32, #tpu.memory_space<vmem>>, vector<2x128xf32>
    %4 = vector.extract_strided_slice %3 {offsets = [0, 0], sizes = [1, 128], strides = [1, 1]} : vector<2x128xf32> to vector<1x128xf32>
    %5 = vector.broadcast %0 : f32 to vector<1x128xf32>
    %6 = arith.mulf %5, %4 : vector<1x128xf32>
    %7 = vector.extract_strided_slice %3 {offsets = [1, 0], sizes = [1, 128], strides = [1, 1]} : vector<2x128xf32> to vector<1x128xf32>
    %8 = vector.broadcast %1 : f32 to vector<1x128xf32>
    %9 = arith.mulf %8, %7 : vector<1x128xf32>
    %10 = arith.addf %6, %9 : vector<1x128xf32>
    %11 = vector.broadcast %2 : f32 to vector<1x128xf32>
    %12 = arith.subf %10, %11 : vector<1x128xf32>
    %c0_3 = arith.constant 0 : index
    %c0_4 = arith.constant 0 : index
    %13 = vector.load %arg4[%c0_3, %c0_4] : memref<1x128xf32, #tpu.memory_space<vmem>>, vector<1x128xf32>
    tpu.vector_store %arg4[%c0_3, %c0_4], %12 {strides = array<i32>} : memref<1x128xf32, #tpu.memory_space<vmem>>, vector<1x128xf32>,
    return
  }
  func.func @transform_0(%arg0: i32) -> i32 {
    %c0_i32 = arith.constant 0 : i32
    %c0_i32_0 = arith.constant 0 : i32
    return %c0_i32 : i32
  }
  func.func @transform_1(%arg0: i32) -> i32 {
    %c0_i32 = arith.constant 0 : i32
    %c0_i32_0 = arith.constant 0 : i32
    return %c0_i32 : i32
  }
  func.func @transform_2(%arg0: i32) -> (i32, i32) {
    %c0_i32 = arith.constant 0 : i32
    %c0_i32_0 = arith.constant 0 : i32
    return %c0_i32, %arg0 : i32, i32
  }
  func.func @transform_3(%arg0: i32) -> (i32, i32) {
    %c0_i32 = arith.constant 0 : i32
    %c0_i32_0 = arith.constant 0 : i32
    return %c0_i32, %arg0 : i32, i32
  }
}

</mosaic_0001>

<bundles_post_ra>
// kernel: tpu_custom_call.1
= control target key start
LH: loop header
LB: loop body
LE: loop exit
PB: predicated region body
PF: predicated region fallthrough
CT: control target
= control target key end

     0   :  { %9 = vsyncpa [#allocation5], 0  ;;  %s143_s0 = inlined_call_operand.vmem [shape: f32[2], index: 0, kind: input, shape index: {}]   ;;  %s144_s1 = inlined_call_operand.<no memory space> [shape: f32[1], index: 1, kind: input, shape index: {}]   ;;  %s145_s2 = inlined_call_operand.vmem [shape: f32[2,128], index: 2, kind: input, shape index: {}]   ;;  %s146_s3 = inlined_call_operand.hbm [shape: f32[1,128], index: 3, kind: output, shape index: {}]  }
   0x1   :  { %10 = vsyncpa [#allocation4], 0  ;;  %s17_s14 = sshll.u32 %s143_s0, 4  ;;  %s18_s14 = int_to_ptr.vmem [resolvable:$true] %s17_s14 }
   0x2   :  { %s62_s15 = scalar_lea.vmem %s18_s14, 16  ;;  %p67_p1 = scmp.lt.s32.totalorder %s18_s14, %s18_s14 }
   0x3   :  { %p63_p0 = scmp.ne.s32.totalorder %s18_s14, %s62_s15  ;;  %p68_p2 = scmp.lt.s32.totalorder %s62_s15, %s62_s15 }
   0x5   :  { %p69_p3 = por %p68_p2, %p67_p1 }
   0x7   :  { %p70_p4 = pnand %p69_p3, %p63_p0 }
   0x9   :  { %73 = shalt.err (!%p70_p4)
}
   0xa   :  { %s100_s16 = smov [#allocation3]  }
   0xb   :  { %20 = dma.vmem_to_smem %s18_s14, 16, %s100_s16, [#allocation5]  }
   0xc   :  { %96 = dma.done.wait [#allocation5], 16  }
   0xd   :  { %97 = vsyncadd [#allocation5], 4294967280 }
   0xe   :  { %28 = sfence }
   0xf   :  { %s29_s17 = sld [smem:[#allocation3]]  ;;  %s59_s18 = sld [smem:[#allocation3 + $0x1]]  ;;  %v32_v0 = vld [vmem:[%s145_s2] sm:$0x3]  ;;  %v41_v6 = vstv %s144_s1 }
  0x10   :  { %s101_s22 = smov [#allocation6]  }
  0x11   :  { %s50_s23 = sshll.u32 %s101_s22, 4  ;;  %s51_s23 = int_to_ptr.vmem [resolvable:$true] %s50_s23 }
  0x12   :  { %s74_s24 = scalar_lea.vmem %s51_s23, 16  ;;  %s78_s25 = scalar_lea.vmem %s51_s23, 32 }
  0x13   :  { %p75_p5 = scmp.ne.s32.totalorder %s51_s23, %s74_s24  ;;  %p79_p6 = scmp.lt.s32.totalorder %s51_s23, %s51_s23 }
  0x14   :  { %p80_p7 = scmp.lt.s32.totalorder %s78_s25, %s74_s24 }
  0x15   :  { %v33_v1 = vstv %s29_s17  ;;  %v35_v2 = vstv %s59_s18 }
  0x16   :  { %v34_v3 = vmul.f32 %v33_v1, %v32_v0  ;;  %v36_v4 = vmul.f32 %v35_v2, %v32_v0  ;;  %p81_p8 = por %p80_p7, %p79_p6 }
  0x18   :  { %v38_v5 = vrot.slane %v36_v4, 1  ;;  %p82_p9 = pnand %p81_p8, %p75_p5 }
  0x1a   :  { %v40_v7 = vadd.f32 %v38_v5, %v34_v3 }
  0x1c   :  { %v42_v8 = vsub.f32 %v40_v7, %v41_v6 }
  0x1e   :  { %43 = vst [vmem:[#allocation6] sm:$0x1] %v42_v8 }
  0x1f   :  { %85 = shalt.err (!%p82_p9)
}
  0x20   :  { %s86_s27 = scalar_lea.hbm %s146_s3, 16 }
  0x21   :  { %p87_p10 = scmp.ne.s32.totalorder %s146_s3, %s86_s27  ;;  %p90_p11 = scmp.lt.u32.totalorder %s86_s27, %s146_s3 }
  0x23   :  { %p92_p12 = pnand %p90_p11, %p87_p10 }
  0x25   :  { %95 = shalt.err (!%p92_p12)
}
  0x26   :  { %53 = dma.vmem_to_hbm [thread:$0]  %s51_s23, 16, %s146_s3, [#allocation4]  }
  0x27   :  { %98 = dma.done.wait [#allocation4], 16  }
  0x28   :  { %99 = vsyncadd [#allocation4], 4294967280 }
  0x29   :  { %57 = vsyncpa [#allocation4], 1 }
  0x2a   :  { %58 = vsyncpa [#allocation5], 1 }

</bundles_post_ra>
